<compile_context>
chip_gen: v6e
topology: v6e:2x2x1
jax: 0.10.0
libtpu: 0.0.40
codegen_flags: <defaults>
</compile_context>

<pallas_src>
import functools

import jax
import jax.numpy as jnp
from jax.experimental import pallas as pl
from jax.experimental.pallas import tpu as pltpu

_MiB = 1024 * 1024


def _cdiv(a, b):
    return -(-a // b)


def _round_up(v, m):
    return _cdiv(v, m) * m


def _tpu_vmem_capacity_bytes():
    """Physical VMEM per TensorCore; conservative (v7x, 64 MiB) fallback."""
    try:
        return int(pltpu.get_tpu_info().vmem_capacity_bytes)
    except Exception:
        return 64 * _MiB


# ---------------------------------------------------------------------------
# Kernels
# ---------------------------------------------------------------------------
# NOTE on the ragged final block: rows past the true end of the array hold
# garbage; rsqrt there may produce Inf/NaN, but Pallas masks those stores, so
# it is harmless.  Do not add NaN checks inside the kernel.


def _ln_kernel(x_ref, scale_ref, shift_ref, o_ref, *, eps):
    x = x_ref[...].astype(jnp.float32)                          # (tile_rows, D)
    mean = jnp.mean(x, axis=-1, keepdims=True)
    # Two-pass (stable) variance; (x - mean) recomputed, not held as a named
    # full-tile intermediate across the reduction.
    var = jnp.mean((x - mean) * (x - mean), axis=-1, keepdims=True)
    inv = jax.lax.rsqrt(var + eps)
    scale = scale_ref[...].astype(jnp.float32)                  # (1, D)
    shift = shift_ref[...].astype(jnp.float32)                  # (1, D)
    o_ref[...] = (scale * ((x - mean) * inv) + shift).astype(o_ref.dtype)


def _ln_kernel_plain(x_ref, o_ref, *, eps):
    x = x_ref[...].astype(jnp.float32)
    mean = jnp.mean(x, axis=-1, keepdims=True)
    var = jnp.mean((x - mean) * (x - mean), axis=-1, keepdims=True)
    inv = jax.lax.rsqrt(var + eps)
    o_ref[...] = ((x - mean) * inv).astype(o_ref.dtype)


def _ln_packed_kernel(x_ref, seg_ref, scale_ref, shift_ref, o_ref, *, eps, emb_dim):
    # k = 128 // emb_dim original rows packed per 128-lane row.  seg is the
    # (128, 128) block-diagonal 0/1 matrix: x @ seg broadcasts each segment's
    # sum to every lane of that segment (MXU has plenty of slack here).
    x = x_ref[...].astype(jnp.float32)                          # (tile_rows, 128)
    seg = seg_ref[...]                                          # (128, 128) f32
    inv_n = jnp.float32(1.0 / emb_dim)
    mean = jnp.dot(x, seg, preferred_element_type=jnp.float32) * inv_n
    c = x - mean
    var = jnp.dot(c * c, seg, preferred_element_type=jnp.float32) * inv_n
    inv = jax.lax.rsqrt(var + eps)
    scale = scale_ref[...].astype(jnp.float32)                  # (1, 128)
    shift = shift_ref[...].astype(jnp.float32)                  # (1, 128)
    o_ref[...] = (scale * (c * inv) + shift).astype(o_ref.dtype)


def _ln_packed_kernel_plain(x_ref, seg_ref, o_ref, *, eps, emb_dim):
    x = x_ref[...].astype(jnp.float32)
    seg = seg_ref[...]
    inv_n = jnp.float32(1.0 / emb_dim)
    mean = jnp.dot(x, seg, preferred_element_type=jnp.float32) * inv_n
    c = x - mean
    var = jnp.dot(c * c, seg, preferred_element_type=jnp.float32) * inv_n
    inv = jax.lax.rsqrt(var + eps)
    o_ref[...] = (c * inv).astype(o_ref.dtype)


# ---------------------------------------------------------------------------
# Tiling
# ---------------------------------------------------------------------------
def _pick_tile_rows(rows, row_width, itemsize, f32_factor, vmem_cap):
    """Row tile for a (rows, row_width) layout.

    Priorities:
      * working set (2x double-buffered in/out tiles + f32 intermediates)
        fits a budget that leaves headroom below physical VMEM;
      * >= ~8 MiB of input per grid step (amortizes ~0.35us/step overhead
        even at v7x HBM bandwidth);
      * grid length >= 4 when there is enough data (pipelining + 2-TC v7x).
    Returns (tile_rows, per_row_vmem_bytes).
    """
    base = max(8, 32 // itemsize)                    # sublane packing multiple
    per_row = 4 * row_width * itemsize + f32_factor * row_width * 4

    if rows <= base:
        # One block covering the whole (tiny) array; block dim == array dim.
        return max(rows, 1), per_row

    rows_up = _round_up(rows, base)

    working_budget = min(vmem_cap - 16 * _MiB, 64 * _MiB)
    budget_rows = max(base, (working_budget // per_row) // base * base)

    target_bytes = 8 * _MiB
    target_rows = max(base, _round_up(_cdiv(target_bytes, row_width * itemsize), base))

    min_steps = min(4, _cdiv(rows_up, base))
    steps_rows = max(base, _round_up(_cdiv(rows_up, min_steps), base))

    tile = min(budget_rows, target_rows, steps_rows, rows_up)
    return max(tile, base), per_row


# ---------------------------------------------------------------------------
# Wrapper
# ---------------------------------------------------------------------------
def layer_norm(x, scale=None, shift=None, *, eps=1e-5, ew_affine=True):
    """LayerNorm over the last axis of x (any leading shape); matches torch
    mean/var(dim=-1, unbiased=False) + optional elementwise affine."""
    orig_shape = x.shape
    emb_dim = orig_shape[-1]
    rows = 1
    for d in orig_shape[:-1]:
        rows *= d
    rows = max(rows, 1)

    if ew_affine:
        if scale is None:
            scale = jnp.ones((emb_dim,), dtype=x.dtype)
        if shift is None:
            shift = jnp.zeros((emb_dim,), dtype=x.dtype)
        scale = jnp.asarray(scale).reshape(emb_dim)
        shift = jnp.asarray(shift).reshape(emb_dim)

    itemsize = jnp.dtype(x.dtype).itemsize
    vmem_cap = _tpu_vmem_capacity_bytes()

    # Lane-packing path: fold k rows into one 128-lane row -> lane-dense
    # loads/stores (no masked vst / wasted vreg lanes).
    k = 128 // emb_dim if (emb_dim < 128 and 128 % emb_dim == 0) else 1
    use_packed = k > 1 and rows % k == 0
    # TODO(synk): emb_dim that is >128 but not a multiple of 128 still runs
    #             with partially-masked lanes in the last vreg column.

    if use_packed:
        row_width = 128
        n_rows = rows // k
        f32_factor = 5        # x, mean, centered, var/inv are full-tile in this path
    else:
        row_width = emb_dim
        n_rows = rows
        f32_factor = 3        # x upcast + one transient; mean/var are (rows, 1)
    x2 = x.reshape(n_rows, row_width)

    tile_rows, per_row = _pick_tile_rows(n_rows, row_width, itemsize, f32_factor, vmem_cap)
    grid = (pl.cdiv(n_rows, tile_rows),)     # ragged final block masked by Pallas

    row_spec = pl.BlockSpec((tile_rows, row_width), lambda i: (i, 0))
    param_spec = pl.BlockSpec((1, row_width), lambda i: (0, 0))

    in_specs = [row_spec]
    args = [x2]
    if use_packed:
        lane = jnp.arange(128)
        seg = (lane[:, None] // emb_dim == lane[None, :] // emb_dim).astype(jnp.float32)
        in_specs.append(pl.BlockSpec((128, 128), lambda i: (0, 0)))
        args.append(seg)
        if ew_affine:
            in_specs += [param_spec, param_spec]
            args += [jnp.tile(scale, k).reshape(1, row_width),
                     jnp.tile(shift, k).reshape(1, row_width)]
            kernel = functools.partial(_ln_packed_kernel, eps=eps, emb_dim=emb_dim)
        else:
            kernel = functools.partial(_ln_packed_kernel_plain, eps=eps, emb_dim=emb_dim)
    else:
        if ew_affine:
            in_specs += [param_spec, param_spec]
            args += [scale.reshape(1, row_width), shift.reshape(1, row_width)]
            kernel = functools.partial(_ln_kernel, eps=eps)
        else:
            kernel = functools.partial(_ln_kernel_plain, eps=eps)

    # VMEM limit: actual working set + margin, but never within ~12 MiB of the
    # physical per-TC VMEM (headroom for Mosaic internal scratch).
    vmem_need = per_row * tile_rows + 512 * 1024
    vmem_limit = int(min(max(vmem_need * 1.25, 32 * _MiB),
                         max(vmem_cap - 12 * _MiB, 32 * _MiB)))

    bytes_accessed = 2 * rows * emb_dim * itemsize
    flops = 8 * rows * emb_dim
    if ew_affine:
        bytes_accessed += 2 * emb_dim * jnp.dtype(scale.dtype).itemsize
    if use_packed:
        flops += 2 * 2 * n_rows * 128 * 128      # the two segment matmuls
    cost = pl.CostEstimate(flops=flops, transcendentals=rows,
                           bytes_accessed=bytes_accessed)

    out = pl.pallas_call(
        kernel,
        out_shape=jax.ShapeDtypeStruct((n_rows, row_width), x.dtype),
        grid=grid,
        in_specs=in_specs,
        out_specs=row_spec,
        compiler_params=pltpu.CompilerParams(
            dimension_semantics=("parallel",),
            vmem_limit_bytes=vmem_limit,
        ),
        cost_estimate=cost,
    )(*args)

    return out.reshape(orig_shape)


def layer_norm_ref(x, scale, shift, eps=1e-5):
    mean = jnp.mean(x, axis=-1, keepdims=True)
    var = jnp.mean((x - mean) ** 2, axis=-1, keepdims=True)
    return scale * (x - mean) / jnp.sqrt(var + eps) + shift


if __name__ == "__main__":
    key = jax.random.PRNGKey(0)
    batch, seq, emb_dim = 2, 8, 32
    x = jax.random.normal(key, (batch, seq, emb_dim), dtype=jnp.float32)

    # nn.Parameter(torch.ones/zeros(emb_dim)) equivalents
    scale = jnp.ones((emb_dim,), dtype=jnp.float32)
    shift = jnp.zeros((emb_dim,), dtype=jnp.float32)

    # affine path (uses the emb_dim<128 lane-packed kernel)
    out = jax.block_until_ready(layer_norm(x, scale, shift, eps=1e-5, ew_affine=True))
    ref = layer_norm_ref(x, scale, shift)
    assert out.shape == x.shape
    assert jnp.allclose(out, ref, atol=1e-5, rtol=1e-5)

    # ew_affine=False path (no scale/shift DMA)
    out2 = jax.block_until_ready(layer_norm(x, eps=1e-5, ew_affine=False))
    ref2 = layer_norm_ref(x, 1.0, 0.0)
    assert jnp.allclose(out2, ref2, atol=1e-5, rtol=1e-5)

    # exercise the unpacked (emb_dim >= 128) path with a non-trivial affine
    x3 = jax.random.normal(jax.random.PRNGKey(1), (4, 6, 256), dtype=jnp.float32)
    s3 = jax.random.normal(jax.random.PRNGKey(2), (256,), dtype=jnp.float32)
    b3 = jax.random.normal(jax.random.PRNGKey(3), (256,), dtype=jnp.float32)
    out3 = jax.block_until_ready(layer_norm(x3, s3, b3))
    assert jnp.allclose(out3, layer_norm_ref(x3, s3, b3), atol=1e-4, rtol=1e-4)

    print("KERNEL_OK")
</pallas_src>

<mosaic_0001>
module attributes {stable_mosaic.version = 11 : i64} {
  func.func @_ln_packed_kernel(%arg0: i32, %arg1: memref<4x128xf32, #tpu.memory_space<vmem>>, %arg2: memref<128x128xf32, #tpu.memory_space<vmem>>, %arg3: memref<1x128xf32, #tpu.memory_space<vmem>>, %arg4: memref<1x128xf32, #tpu.memory_space<vmem>>, %arg5: memref<4x128xf32, #tpu.memory_space<vmem>>) attributes {dimension_semantics = [#tpu.dimension_semantics<parallel>], iteration_bounds = array<i64: 1>, scalar_prefetch = 0 : i64, scratch_operands = 0 : i64, tpu.core_type = #tpu.core_type<tc>, window_params = [{transform_indices = @transform_0, window_bounds = array<i64: 4, 128>}, {pipeline_mode = #tpu.pipeline_mode<synchronous>, transform_indices = @transform_1, window_bounds = array<i64: 128, 128>}, {pipeline_mode = #tpu.pipeline_mode<synchronous>, transform_indices = @transform_2, window_bounds = array<i64: 1, 128>}, {pipeline_mode = #tpu.pipeline_mode<synchronous>, transform_indices = @transform_3, window_bounds = array<i64: 1, 128>}, {transform_indices = @transform_4, window_bounds = array<i64: 4, 128>}]} {
    %c0 = arith.constant 0 : index
    %c0_0 = arith.constant 0 : index
    %0 = vector.load %arg1[%c0, %c0_0] : memref<4x128xf32, #tpu.memory_space<vmem>>, vector<4x128xf32>
    %c0_1 = arith.constant 0 : index
    %c0_2 = arith.constant 0 : index
    %1 = vector.load %arg2[%c0_1, %c0_2] : memref<128x128xf32, #tpu.memory_space<vmem>>, vector<128x128xf32>
    %cst = arith.constant dense<0.000000e+00> : vector<4x128xf32>
    %2 = tpu.matmul %0, %1, %cst {dimension_numbers = #tpu.dot_dimension_numbers<[1], [0], [0], [1], [0, 0, 1, 1], [], []>} : vector<4x128xf32>, vector<128x128xf32>, vector<4x128xf32> -> vector<4x128xf32>
    %cst_3 = arith.constant 3.125000e-02 : f32
    %3 = vector.broadcast %cst_3 : f32 to vector<4x128xf32>
    %4 = arith.mulf %2, %3 : vector<4x128xf32>
    %5 = arith.subf %0, %4 : vector<4x128xf32>
    %6 = arith.mulf %5, %5 : vector<4x128xf32>
    %cst_4 = arith.constant dense<0.000000e+00> : vector<4x128xf32>
    %7 = tpu.matmul %6, %1, %cst_4 {dimension_numbers = #tpu.dot_dimension_numbers<[1], [0], [0], [1], [0, 0, 1, 1], [], []>} : vector<4x128xf32>, vector<128x128xf32>, vector<4x128xf32> -> vector<4x128xf32>
    %cst_5 = arith.constant 3.125000e-02 : f32
    %8 = vector.broadcast %cst_5 : f32 to vector<4x128xf32>
    %9 = arith.mulf %7, %8 : vector<4x128xf32>
    %cst_6 = arith.constant 9.99999974E-6 : f32
    %10 = vector.broadcast %cst_6 : f32 to vector<4x128xf32>
    %11 = arith.addf %9, %10 : vector<4x128xf32>
    %12 = math.rsqrt %11 : vector<4x128xf32>
    %c0_7 = arith.constant 0 : index
    %c0_8 = arith.constant 0 : index
    %13 = vector.load %arg3[%c0_7, %c0_8] : memref<1x128xf32, #tpu.memory_space<vmem>>, vector<1x128xf32>
    %c0_9 = arith.constant 0 : index
    %c0_10 = arith.constant 0 : index
    %14 = vector.load %arg4[%c0_9, %c0_10] : memref<1x128xf32, #tpu.memory_space<vmem>>, vector<1x128xf32>
    %15 = arith.mulf %5, %12 : vector<4x128xf32>
    %16 = vector.broadcast %13 : vector<1x128xf32> to vector<4x128xf32>
    %17 = arith.mulf %16, %15 : vector<4x128xf32>
    %18 = vector.broadcast %14 : vector<1x128xf32> to vector<4x128xf32>
    %19 = arith.addf %17, %18 : vector<4x128xf32>
    %c0_11 = arith.constant 0 : index
    %c0_12 = arith.constant 0 : index
    %20 = vector.load %arg5[%c0_11, %c0_12] : memref<4x128xf32, #tpu.memory_space<vmem>>, vector<4x128xf32>
    tpu.vector_store %arg5[%c0_11, %c0_12], %19 {strides = array<i32>} : memref<4x128xf32, #tpu.memory_space<vmem>>, vector<4x128xf32>,
    return
  }
  func.func @transform_0(%arg0: i32) -> (i32, i32) {
    %c0_i32 = arith.constant 0 : i32
    %c0_i32_0 = arith.constant 0 : i32
    return %arg0, %c0_i32 : i32, i32
  }
  func.func @transform_1(%arg0: i32) -> (i32, i32) {
    %c0_i32 = arith.constant 0 : i32
    %c0_i32_0 = arith.constant 0 : i32
    %c0_i32_1 = arith.constant 0 : i32
    return %c0_i32, %c0_i32_0 : i32, i32
  }
  func.func @transform_2(%arg0: i32) -> (i32, i32) {
    %c0_i32 = arith.constant 0 : i32
    %c0_i32_0 = arith.constant 0 : i32
    %c0_i32_1 = arith.constant 0 : i32
    return %c0_i32, %c0_i32_0 : i32, i32
  }
  func.func @transform_3(%arg0: i32) -> (i32, i32) {
    %c0_i32 = arith.constant 0 : i32
    %c0_i32_0 = arith.constant 0 : i32
    %c0_i32_1 = arith.constant 0 : i32
    return %c0_i32, %c0_i32_0 : i32, i32
  }
  func.func @transform_4(%arg0: i32) -> (i32, i32) {
    %c0_i32 = arith.constant 0 : i32
    %c0_i32_0 = arith.constant 0 : i32
    return %arg0, %c0_i32 : i32, i32
  }
}

</mosaic_0001>

<bundles_post_ra>
// kernel: tpu_custom_call.1
= control target key start
LH: loop header
LB: loop body
LE: loop exit
PB: predicated region body
PF: predicated region fallthrough
CT: control target
= control target key end

     0   :  { %9 = vsyncpa [#allocation3], 0  ;;  %s503_s0 = inlined_call_operand.hbm [shape: f32[4,128], index: 0, kind: input, shape index: {}]   ;;  %s504_s1 = inlined_call_operand.hbm [shape: f32[128,128], index: 1, kind: input, shape index: {}]   ;;  %s505_s2 = inlined_call_operand.vmem [shape: f32[1,128], index: 2, kind: input, shape index: {}]   ;;  %s506_s3 = inlined_call_operand.vmem [shape: f32[1,128], index: 3, kind: input, shape index: {}]   ;;  %s507_s4 = inlined_call_operand.hbm [shape: f32[4,128], index: 4, kind: output, shape index: {}]  }
   0x1   :  { %10 = vsyncpa [#allocation6], 0 }
   0x2   :  { %11 = vsyncpa [#allocation4], 0  ;;  %s422_s15 = smov [#allocation2]   ;;  %s423_s17 = smov [#allocation5]  }
   0x3   :  { %s18_s16 = sshll.u32 %s422_s15, 4  ;;  %s27_s18 = sshll.u32 %s423_s17, 4  ;;  %s19_s16 = int_to_ptr.vmem [resolvable:$true] %s18_s16  ;;  %s28_s18 = int_to_ptr.vmem [resolvable:$true] %s27_s18 }
   0x4   :  { %s364_s19 = scalar_lea.vmem %s19_s16, 64  ;;  %p369_p1 = scmp.lt.s32.totalorder %s19_s16, %s19_s16 }
   0x5   :  { %p365_p0 = scmp.ne.s32.totalorder %s19_s16, %s364_s19  ;;  %p370_p2 = scmp.lt.s32.totalorder %s364_s19, %s364_s19 }
   0x7   :  { %p371_p3 = por %p370_p2, %p369_p1 }
   0x9   :  { %p372_p4 = pnand %p371_p3, %p365_p0 }
   0xb   :  { %375 = shalt.err (!%p372_p4)
}
   0xc   :  { %21 = dma.hbm_to_vmem [thread:$0]  %s503_s0, 64, %s19_s16, [#allocation3]  }
   0xd   :  { %s384_s22 = scalar_lea.vmem %s28_s18, 2048  ;;  %p389_p6 = scmp.lt.s32.totalorder %s28_s18, %s28_s18 }
   0xe   :  { %p385_p5 = scmp.ne.s32.totalorder %s28_s18, %s384_s22  ;;  %p390_p7 = scmp.lt.s32.totalorder %s384_s22, %s384_s22 }
  0x10   :  { %p391_p8 = por %p390_p7, %p389_p6 }
  0x12   :  { %p392_p9 = pnand %p391_p8, %p385_p5 }
  0x14   :  { %395 = shalt.err (!%p392_p9)
}
  0x15   :  { %s424_s23 = smov 128   ;;  %s425_s24 = smov 8  }
  0x16   :  { %33 = dma.hbm_to_vmem [thread:$0]  %s504_s1, 2048, %s28_s18, [#allocation6], %s424_s23, %s424_s23, %s425_s24  }
  0x17   :  { %416 = dma.done.wait [#allocation3], 64  }
  0x18   :  { %417 = vsyncadd [#allocation3], 4294967232 }
  0x19   :  { %418 = dma.done.wait [#allocation6], 2048  }
  0x1a   :  { %419 = vsyncadd [#allocation6], 4294965248  ;;  %v426_v0 = vmov 0.0   ;;  %vm427_vm0 = vmmov 0   ;;  %v60_v1 = vld [vmem:[#allocation5 + $0x78] sm:$0xff]  ;;  %v59_v2 = vld [vmem:[#allocation5 + $0x70] sm:$0xff] }
  0x1b   :  { %277 = vmatprep.subr.mxu0 %v426_v0  ;;  %309 = vmatprep.mubr.msk.f32.mxu0 %vm427_vm0, %v426_v0  ;;  %v58_v3 = vld [vmem:[#allocation5 + $0x68] sm:$0xff]  ;;  %v57_v4 = vld [vmem:[#allocation5 + $0x60] sm:$0xff]  ;;  %v56_v5 = vld [vmem:[#allocation5 + $0x58] sm:$0xff]  ;;  %s428_s29 = smov [#allocation7]  }
  0x1c   :  { %312 = vmatprep.subr.mxu1 %v426_v0  ;;  %344 = vmatprep.mubr.msk.f32.mxu1 %vm427_vm0, %v426_v0  ;;  %v55_v6 = vld [vmem:[#allocation5 + $0x50] sm:$0xff]  ;;  %v54_v7 = vld [vmem:[#allocation5 + $0x48] sm:$0xff]  ;;  %v53_v8 = vld [vmem:[#allocation5 + $0x40] sm:$0xff]  ;;  %s231_s30 = sshll.u32 %s428_s29, 4  ;;  %s232_s30 = int_to_ptr.vmem [resolvable:$true] %s231_s30 }
  0x1d   :  { %278 = vmatpush3.msra.mxu0 %v60_v1  ;;  %313 = vmatpush3.msra.mxu1 %v60_v1  ;;  %v52_v9 = vld [vmem:[#allocation5 + $0x38] sm:$0xff]  ;;  %v51_v10 = vld [vmem:[#allocation5 + $0x30] sm:$0xff]  ;;  %v50_v11 = vld [vmem:[#allocation5 + $0x28] sm:$0xff]  ;;  %s396_s5 = scalar_lea.vmem %s232_s30, 64  ;;  %p401_p11 = scmp.lt.s32.totalorder %s232_s30, %s232_s30 }
  0x1e   :  { %279 = vmatprep.subr.mxu0 %v426_v0  ;;  %314 = vmatprep.subr.mxu1 %v426_v0  ;;  %v49_v12 = vld [vmem:[#allocation5 + $0x20] sm:$0xff]  ;;  %v48_v13 = vld [vmem:[#allocation5 + $0x18] sm:$0xff]  ;;  %v47_v14 = vld [vmem:[#allocation5 + $0x10] sm:$0xff]  ;;  %p397_p10 = scmp.ne.s32.totalorder %s232_s30, %s396_s5  ;;  %p402_p12 = scmp.lt.s32.totalorder %s396_s5, %s396_s5 }
  0x1f   :  { %280 = vmatpush3.msra.mxu0 %v59_v2  ;;  %315 = vmatpush3.msra.mxu1 %v59_v2  ;;  %v46_v15 = vld [vmem:[#allocation5 + $0x8] sm:$0xff]  ;;  %v45_v16 = vld [vmem:[#allocation5] sm:$0xff]  ;;  %v44_v17 = vld [vmem:[#allocation2] sm:$0xf] }
  0x20   :  { %281 = vmatprep.subr.mxu0 %v426_v0  ;;  %316 = vmatprep.subr.mxu1 %v426_v0  ;;  %v241_v28 = vld [vmem:[%s505_s2] ss:$0 sm:$0xff]  ;;  %p403_p13 = por %p402_p12, %p401_p11 }
  0x21   :  { %282 = vmatpush3.msra.mxu0 %v58_v3  ;;  %317 = vmatpush3.msra.mxu1 %v58_v3  ;;  %v242_v30 = vld [vmem:[%s506_s3] ss:$0 sm:$0xff] }
  0x22   :  { %283 = vmatprep.subr.mxu0 %v426_v0  ;;  %318 = vmatprep.subr.mxu1 %v426_v0  ;;  %p404_p0 = pnand %p403_p13, %p397_p10 }
  0x23   :  { %284 = vmatpush3.msra.mxu0 %v57_v4  ;;  %319 = vmatpush3.msra.mxu1 %v57_v4 }
  0x24   :  { %285 = vmatprep.subr.mxu0 %v426_v0  ;;  %320 = vmatprep.subr.mxu1 %v426_v0 }
  0x25   :  { %286 = vmatpush3.msra.mxu0 %v56_v5  ;;  %321 = vmatpush3.msra.mxu1 %v56_v5 }
  0x26   :  { %287 = vmatprep.subr.mxu0 %v426_v0  ;;  %322 = vmatprep.subr.mxu1 %v426_v0 }
  0x27   :  { %288 = vmatpush3.msra.mxu0 %v55_v6  ;;  %323 = vmatpush3.msra.mxu1 %v55_v6 }
  0x28   :  { %289 = vmatprep.subr.mxu0 %v426_v0  ;;  %324 = vmatprep.subr.mxu1 %v426_v0 }
  0x29   :  { %290 = vmatpush3.msra.mxu0 %v54_v7  ;;  %325 = vmatpush3.msra.mxu1 %v54_v7 }
  0x2a   :  { %291 = vmatprep.subr.mxu0 %v426_v0  ;;  %326 = vmatprep.subr.mxu1 %v426_v0 }
  0x2b   :  { %292 = vmatpush3.msra.mxu0 %v53_v8  ;;  %327 = vmatpush3.msra.mxu1 %v53_v8 }
  0x2c   :  { %293 = vmatprep.subr.mxu0 %v426_v0  ;;  %328 = vmatprep.subr.mxu1 %v426_v0 }
  0x2d   :  { %294 = vmatpush3.msra.mxu0 %v52_v9  ;;  %329 = vmatpush3.msra.mxu1 %v52_v9 }
  0x2e   :  { %295 = vmatprep.subr.mxu0 %v426_v0  ;;  %330 = vmatprep.subr.mxu1 %v426_v0 }
  0x2f   :  { %296 = vmatpush3.msra.mxu0 %v51_v10  ;;  %331 = vmatpush3.msra.mxu1 %v51_v10 }
  0x30   :  { %297 = vmatprep.subr.mxu0 %v426_v0  ;;  %332 = vmatprep.subr.mxu1 %v426_v0 }
  0x31   :  { %298 = vmatpush3.msra.mxu0 %v50_v11  ;;  %333 = vmatpush3.msra.mxu1 %v50_v11 }
  0x32   :  { %299 = vmatprep.subr.mxu0 %v426_v0  ;;  %334 = vmatprep.subr.mxu1 %v426_v0 }
  0x33   :  { %300 = vmatpush3.msra.mxu0 %v49_v12  ;;  %335 = vmatpush3.msra.mxu1 %v49_v12 }
  0x34   :  { %301 = vmatprep.subr.mxu0 %v426_v0  ;;  %336 = vmatprep.subr.mxu1 %v426_v0 }
  0x35   :  { %302 = vmatpush3.msra.mxu0 %v48_v13  ;;  %337 = vmatpush3.msra.mxu1 %v48_v13 }
  0x36   :  { %303 = vmatprep.subr.mxu0 %v426_v0  ;;  %338 = vmatprep.subr.mxu1 %v426_v0 }
  0x37   :  { %304 = vmatpush3.msra.mxu0 %v47_v14  ;;  %339 = vmatpush3.msra.mxu1 %v47_v14 }
  0x38   :  { %305 = vmatprep.subr.mxu0 %v426_v0  ;;  %340 = vmatprep.subr.mxu1 %v426_v0 }
  0x39   :  { %306 = vmatpush3.msra.mxu0 %v46_v15  ;;  %341 = vmatpush3.msra.mxu1 %v46_v15 }
  0x3a   :  { %307 = vmatprep.subr.mxu0 %v426_v0  ;;  %342 = vmatprep.subr.mxu1 %v426_v0 }
  0x3b   :  { %308 = vmatpush3.msra.mxu0 %v45_v16  ;;  %343 = vmatpush3.msra.mxu1 %v45_v16 }
  0x3c   :  { %310 = vmatmul.mubr.f32.vlgmr.msra.gmra.mxu0 %v44_v17 }
  0xfc   :  { %v127_v18 = vpop.f32.mrf.mxu0 }
  0xfd   :  { %v131_v19 = vmul.f32 0.03125, %v127_v18 }
  0xfe   :  { %v311_v20 = vpop.f32.mrf.mxu0 }
  0xff   :  { %v132_v21 = vsub.f32 %v44_v17, %v131_v19 }
 0x101   :  { %v133_v22 = vmul.f32 %v132_v21, %v132_v21 }
 0x103   :  { %345 = vmatmul.mubr.f32.vlgmr.msra.gmra.mxu1 %v133_v22 }
 0x1c3   :  { %v200_v23 = vpop.f32.mrf.mxu1 }
 0x1c4   :  { %v204_v24 = vmul.f32 0.03125, %v200_v23 }
 0x1c5   :  { %v346_v25 = vpop.f32.mrf.mxu1 }
 0x1c6   :  { %v205_v26 = vadd.f32 1e-05, %v204_v24 }
 0x1c8   :  { %354 = vrsqrt.f32 %v205_v26 }
 0x1d5   :  { %v355_v27 = vpop.eup %354 }
 0x1d6   :  { %v209_v29 = vmul.f32 %v355_v27, %v132_v21 }
 0x1d8   :  { %v216_v31 = vmul.f32 %v241_v28, %v209_v29 }
 0x1da   :  { %v223_v32 = vadd.f32 %v242_v30, %v216_v31 }
 0x1dc   :  { %224 = vst [vmem:[#allocation7] sm:$0xf] %v223_v32 }
 0x1dd   :  { %407 = shalt.err (!%p404_p0)
}
 0x1de   :  { %234 = dma.vmem_to_hbm [thread:$0]  %s232_s30, 64, %s507_s4, [#allocation4]  }
 0x1df   :  { %420 = dma.done.wait [#allocation4], 64  }
 0x1e0   :  { %421 = vsyncadd [#allocation4], 4294967232 }
 0x1e1   :  { %238 = vsyncpa [#allocation3], 1 }
 0x1e2   :  { %239 = vsyncpa [#allocation6], 1 }
 0x1e3   :  { %240 = vsyncpa [#allocation4], 1 }

</bundles_post_ra>
